<compile_context>
chip_gen: v7x
topology: tpu7x:2x2x1
jax: 0.10.0
libtpu: 0.0.40
codegen_flags: <defaults>
</compile_context>

<pallas_src>
import jax
import jax.numpy as jnp
from jax.experimental import pallas as pl
from jax.experimental.pallas import tpu as pltpu

EPS = 1e-6
_LANE = 128
_SUBLANE = 8
_SINGLE_BUFFER_WEIGHT_BYTES = 4 << 20   # only single-buffer big resident weights


def _activation_fn(name):
    if name == "relu":
        return lambda h: jnp.maximum(h, 0.0)
    if name == "tanh":
        return jnp.tanh
    if name == "sigmoid":
        return jax.nn.sigmoid
    raise ValueError(f"unknown activation {name!r}")


def _round_up(v, m):
    return (v + m - 1) // m * m


def _padded_bytes(shape, itemsize=4):
    """Physical VMEM bytes of a tile: last dim -> 128 lanes, 2nd-last -> 8 sublanes."""
    dims = [int(d) for d in shape]
    if len(dims) == 1:
        dims = [1] + dims
    dims[-1] = _round_up(dims[-1], _LANE)
    dims[-2] = _round_up(dims[-2], _SUBLANE)
    n = 1
    for d in dims:
        n *= d
    return n * itemsize


def _vmem_limit_bytes():
    """32 MiB is safe everywhere; 128-MiB-VMEM parts (v4/v5/v6) get 64 MiB."""
    try:
        kind = jax.devices()[0].device_kind.lower()
    except Exception:
        kind = ""
    if any(t in kind for t in ("v4", "v5", "v6")):
        return 64 << 20
    return 32 << 20


def _make_kernel(num_shared, expmap, activation):
    act = _activation_fn(activation)

    def kernel(*refs):
        # refs = x, (w, b)*num_shared, hw_fused, hb_fused, [bd, bd_t], outputs...
        x_ref = refs[0]
        shared = refs[1:1 + 2 * num_shared]
        p = 1 + 2 * num_shared
        hw_ref = refs[p]         # (hidden, k*out)
        hb_ref = refs[p + 1]     # (1, k*out)

        # Shared trunk: Linear + activation; weights are VMEM-resident.
        h = x_ref[...]
        for li in range(num_shared):
            w = shared[2 * li][...]
            b = shared[2 * li + 1][...]
            h = act(jnp.dot(h, w, preferred_element_type=jnp.float32) + b)

        # All k heads in one fused matmul: (TB, hidden) @ (hidden, k*out).
        y_all = jnp.dot(h, hw_ref[...], preferred_element_type=jnp.float32) + hb_ref[...]

        if not expmap:
            out_ref = refs[p + 2]              # (TB, k*out), single dense store
            out_ref[...] = y_all.astype(out_ref.dtype)
            return

        bd_ref = refs[p + 2]                   # (k*out, k)  block-diag ones
        bdt_ref = refs[p + 3]                  # (k, k*out)  its transpose
        scaled_ref = refs[p + 4]               # (TB, k*out) output
        cos_ref = refs[p + 5]                  # (TB, k)     output

        # ExpMap_sphere for all heads at once: per-head |y|^2 via one
        # block-diag-ones matmul (MXU slot is idle); transcendentals run once
        # on a (TB, k) tensor.
        ssq = jnp.dot(y_all * y_all, bd_ref[...],
                      preferred_element_type=jnp.float32,
                      precision=jax.lax.Precision.HIGHEST)            # (TB, k)
        norm = jnp.sqrt(ssq)
        cos_ref[...] = jnp.cos(norm).astype(cos_ref.dtype)
        scale = jnp.sin(norm) / (norm + EPS)                          # (TB, k)
        # Broadcast each head's scale across its out_feat lanes (exact copy).
        scale_full = jnp.dot(scale, bdt_ref[...],
                             preferred_element_type=jnp.float32,
                             precision=jax.lax.Precision.HIGHEST)     # (TB, k*out)
        scaled_ref[...] = (scale_full * y_all).astype(scaled_ref.dtype)

    return kernel


def multi_head_mlp_forward(x, shared_params, head_w, head_b, *,
                           activation="relu", expmap=False, max_batch_tile=2048):
    """x: (B, inputs); shared_params: list of (w:(in,out), b:(1,out));
    head_w: (k, hidden, out); head_b: (k, 1, out).
    Returns (B, out_dim, k) with out_dim = out (+1 if expmap)."""
    num_shared = len(shared_params)
    k, hidden_last, out_feat = (int(d) for d in head_w.shape)
    ko = k * out_feat
    bsz, in_dim = (int(d) for d in x.shape)
    dtype = x.dtype

    # Fuse the k heads: (k, hidden, out) -> (hidden, k*out); (k, 1, out) -> (1, k*out).
    hw_fused = jnp.transpose(head_w, (1, 0, 2)).reshape(hidden_last, ko)
    hb_fused = head_b.reshape(1, ko)

    const_map = lambda i: (0, 0)

    weights = [arr for wb in shared_params for arr in wb] + [hw_fused, hb_fused]
    if expmap:
        # Block-diagonal ones: bd[i*out_feat + m, i] = 1.
        bd = jnp.repeat(jnp.eye(k, dtype=jnp.float32), out_feat, axis=0)   # (k*out, k)
        weights += [bd, bd.T]

    def weight_spec(arr):
        shape = tuple(int(d) for d in arr.shape)
        if _padded_bytes(shape) >= _SINGLE_BUFFER_WEIGHT_BYTES:
            # Constant index_map already avoids re-DMA; single-buffer big weights.
            return pl.BlockSpec(shape, const_map, pipeline_mode=pl.Buffered(1))
        return pl.BlockSpec(shape, const_map)

    weight_vmem = 0
    for arr in weights:
        nbytes = _padded_bytes(arr.shape)
        bufs = 1 if nbytes >= _SINGLE_BUFFER_WEIGHT_BYTES else 2
        weight_vmem += bufs * nbytes

    vmem_limit = _vmem_limit_bytes()

    # (8,128)-honest per-row streaming bytes: double-buffered x + outputs plus a
    # few live f32 intermediates at the widest layer's (lane-padded) width.
    hidden_dims = [int(w.shape[1]) for w, _ in shared_params]
    in_p = _round_up(in_dim, _LANE)
    ko_p = _round_up(ko, _LANE)
    k_p = _round_up(k, _LANE) if expmap else 0
    widest_p = max([in_p, ko_p] + [_round_up(d, _LANE) for d in hidden_dims])
    per_row_bytes = 4 * (2 * in_p + 2 * ko_p + 2 * k_p + 4 * widest_p)

    budget = max(4 << 20, vmem_limit - weight_vmem - (8 << 20))
    tb = (budget // per_row_bytes) // _SUBLANE * _SUBLANE
    tb = max(_SUBLANE, min(tb, max_batch_tile))
    # Keep >= 2 grid steps when the batch allows it (v7x megacore sharding).
    tb = min(tb, max(_SUBLANE, _round_up(pl.cdiv(bsz, 2), _SUBLANE)))

    # No jnp.pad copy: let Pallas handle the partial last block (rows are
    # independent; out-of-bounds output rows are dropped).
    grid = (pl.cdiv(bsz, tb),)

    in_specs = [pl.BlockSpec((tb, in_dim), lambda i: (i, 0))]
    in_specs += [weight_spec(arr) for arr in weights]
    flat_inputs = [x] + weights

    if expmap:
        out_shape = (jax.ShapeDtypeStruct((bsz, ko), dtype),
                     jax.ShapeDtypeStruct((bsz, k), dtype))
        out_specs = (pl.BlockSpec((tb, ko), lambda i: (i, 0)),
                     pl.BlockSpec((tb, k), lambda i: (i, 0)))
    else:
        out_shape = jax.ShapeDtypeStruct((bsz, ko), dtype)
        out_specs = pl.BlockSpec((tb, ko), lambda i: (i, 0))

    # Advisory cost estimate for XLA scheduling around the custom call.
    flops_per_row = 0
    d_prev = in_dim
    for d in hidden_dims:
        flops_per_row += 2 * d_prev * d
        d_prev = d
    flops_per_row += 2 * d_prev * ko
    if expmap:
        flops_per_row += 4 * ko * k + 3 * ko       # block-diag matmuls + elementwise
    act_transc = 0 if activation == "relu" else sum(hidden_dims)
    cost = pl.CostEstimate(
        flops=int(flops_per_row * bsz),
        transcendentals=int(((4 * k) if expmap else 0) + act_transc) * bsz,
        bytes_accessed=int(4 * bsz * (in_dim + ko + (k if expmap else 0))
                           + 4 * sum(int(a.size) for a in weights)),
    )

    kernel = _make_kernel(num_shared, expmap, activation)

    result = pl.pallas_call(
        kernel,
        out_shape=out_shape,
        grid=grid,
        in_specs=in_specs,
        out_specs=out_specs,
        compiler_params=pltpu.CompilerParams(
            dimension_semantics=("parallel",),     # megacore sharding on v7x
            vmem_limit_bytes=vmem_limit,
        ),
        cost_estimate=cost,
    )(*flat_inputs)

    if expmap:
        scaled, cosn = result
        # (B, k*out) -> (B, k, out) -> (B, out, k); prepend cos row -> (B, out+1, k)
        scaled_t = jnp.transpose(scaled.reshape(bsz, k, out_feat), (0, 2, 1))
        return jnp.concatenate([cosn[:, None, :], scaled_t], axis=1)
    return jnp.transpose(result.reshape(bsz, k, out_feat), (0, 2, 1))


def reference_forward(x, shared_params, head_w, head_b, *, activation, expmap):
    act = _activation_fn(activation)
    h = x
    for w, b in shared_params:
        h = act(h @ w + b)
    outs = []
    for i in range(head_w.shape[0]):
        y = h @ head_w[i] + head_b[i]
        if expmap:
            bsz = y.shape[0]
            xi_norm = jnp.linalg.norm(y, axis=-1, keepdims=True)
            zero_xi = jnp.concatenate([jnp.zeros((bsz, 1), y.dtype), y], axis=-1)
            e1 = jnp.eye(y.shape[-1] + 1, 1, dtype=y.dtype).squeeze()
            v = e1 * jnp.cos(xi_norm) + (1.0 / (xi_norm + EPS)) * zero_xi * jnp.sin(xi_norm)
        else:
            v = y
        outs.append(v[..., None])
    return jnp.concatenate(outs, axis=-1)


if __name__ == "__main__":
    # Small config consistent with MultiHeadMLP(inputs, hiddens, out, 'relu', k, expmap).
    inputs = 16
    hiddens = [32, 32]
    out_feat = 8
    k = 4
    activation = "relu"

    key = jax.random.PRNGKey(0)
    keys = jax.random.split(key, 2 * (len(hiddens) + 1) + 1)

    dims = [inputs] + hiddens
    shared_params = []
    ki = 0
    for d_in, d_out in zip(dims[:-1], dims[1:]):
        w = jax.random.normal(keys[ki], (d_in, d_out), jnp.float32) * 0.1
        b = jax.random.normal(keys[ki + 1], (1, d_out), jnp.float32) * 0.1
        shared_params.append((w, b))
        ki += 2
    head_w = jax.random.normal(keys[ki], (k, hiddens[-1], out_feat), jnp.float32) * 0.1
    head_b = jax.random.normal(keys[ki + 1], (k, 1, out_feat), jnp.float32) * 0.1

    # batch=8 exercises the exact-tile path; batch=13 exercises the partial
    # last block (no jnp.pad anymore).
    for batch in (8, 13):
        x = jax.random.normal(keys[-1], (batch, inputs), jnp.float32)
        for expmap in (True, False):
            out = multi_head_mlp_forward(x, shared_params, head_w, head_b,
                                         activation=activation, expmap=expmap)
            out = jax.block_until_ready(out)
            ref = reference_forward(x, shared_params, head_w, head_b,
                                    activation=activation, expmap=expmap)
            expected_shape = (batch, out_feat + 1 if expmap else out_feat, k)
            assert out.shape == expected_shape, (out.shape, expected_shape)
            assert jnp.allclose(out, ref, atol=2e-5, rtol=2e-5), \
                float(jnp.max(jnp.abs(out - ref)))

    print("KERNEL_OK")
</pallas_src>

<mosaic_0001>
module attributes {stable_mosaic.version = 11 : i64} {
  func.func @kernel(%arg0: i32, %arg1: memref<8x16xf32, #tpu.memory_space<vmem>>, %arg2: memref<16x32xf32, #tpu.memory_space<vmem>>, %arg3: memref<1x32xf32, #tpu.memory_space<vmem>>, %arg4: memref<32x32xf32, #tpu.memory_space<vmem>>, %arg5: memref<1x32xf32, #tpu.memory_space<vmem>>, %arg6: memref<32x32xf32, #tpu.memory_space<vmem>>, %arg7: memref<1x32xf32, #tpu.memory_space<vmem>>, %arg8: memref<32x4xf32, #tpu.memory_space<vmem>>, %arg9: memref<4x32xf32, #tpu.memory_space<vmem>>, %arg10: memref<8x32xf32, #tpu.memory_space<vmem>>, %arg11: memref<8x4xf32, #tpu.memory_space<vmem>>) attributes {dimension_semantics = [#tpu.dimension_semantics<parallel>], iteration_bounds = array<i64: 1>, scalar_prefetch = 0 : i64, scratch_operands = 0 : i64, tpu.core_type = #tpu.core_type<tc>, window_params = [{transform_indices = @transform_0, window_bounds = array<i64: 8, 16>}, {pipeline_mode = #tpu.pipeline_mode<synchronous>, transform_indices = @transform_1, window_bounds = array<i64: 16, 32>}, {pipeline_mode = #tpu.pipeline_mode<synchronous>, transform_indices = @transform_2, window_bounds = array<i64: 1, 32>}, {pipeline_mode = #tpu.pipeline_mode<synchronous>, transform_indices = @transform_3, window_bounds = array<i64: 32, 32>}, {pipeline_mode = #tpu.pipeline_mode<synchronous>, transform_indices = @transform_4, window_bounds = array<i64: 1, 32>}, {pipeline_mode = #tpu.pipeline_mode<synchronous>, transform_indices = @transform_5, window_bounds = array<i64: 32, 32>}, {pipeline_mode = #tpu.pipeline_mode<synchronous>, transform_indices = @transform_6, window_bounds = array<i64: 1, 32>}, {pipeline_mode = #tpu.pipeline_mode<synchronous>, transform_indices = @transform_7, window_bounds = array<i64: 32, 4>}, {pipeline_mode = #tpu.pipeline_mode<synchronous>, transform_indices = @transform_8, window_bounds = array<i64: 4, 32>}, {transform_indices = @transform_9, window_bounds = array<i64: 8, 32>}, {transform_indices = @transform_10, window_bounds = array<i64: 8, 4>}]} {
    %c0 = arith.constant 0 : index
    %c0_0 = arith.constant 0 : index
    %0 = vector.load %arg1[%c0, %c0_0] : memref<8x16xf32, #tpu.memory_space<vmem>>, vector<8x16xf32>
    %c0_1 = arith.constant 0 : index
    %c0_2 = arith.constant 0 : index
    %1 = vector.load %arg2[%c0_1, %c0_2] : memref<16x32xf32, #tpu.memory_space<vmem>>, vector<16x32xf32>
    %c0_3 = arith.constant 0 : index
    %c0_4 = arith.constant 0 : index
    %2 = vector.load %arg3[%c0_3, %c0_4] : memref<1x32xf32, #tpu.memory_space<vmem>>, vector<1x32xf32>
    %cst = arith.constant dense<0.000000e+00> : vector<8x32xf32>
    %3 = tpu.matmul %0, %1, %cst {dimension_numbers = #tpu.dot_dimension_numbers<[1], [0], [0], [1], [0, 0, 1, 1], [], []>} : vector<8x16xf32>, vector<16x32xf32>, vector<8x32xf32> -> vector<8x32xf32>
    %4 = vector.broadcast %2 : vector<1x32xf32> to vector<8x32xf32>
    %5 = arith.addf %3, %4 : vector<8x32xf32>
    %cst_5 = arith.constant 0.000000e+00 : f32
    %6 = vector.broadcast %cst_5 : f32 to vector<8x32xf32>
    %7 = arith.maximumf %5, %6 : vector<8x32xf32>
    %c0_6 = arith.constant 0 : index
    %c0_7 = arith.constant 0 : index
    %8 = vector.load %arg4[%c0_6, %c0_7] : memref<32x32xf32, #tpu.memory_space<vmem>>, vector<32x32xf32>
    %c0_8 = arith.constant 0 : index
    %c0_9 = arith.constant 0 : index
    %9 = vector.load %arg5[%c0_8, %c0_9] : memref<1x32xf32, #tpu.memory_space<vmem>>, vector<1x32xf32>
    %cst_10 = arith.constant dense<0.000000e+00> : vector<8x32xf32>
    %10 = tpu.matmul %7, %8, %cst_10 {dimension_numbers = #tpu.dot_dimension_numbers<[1], [0], [0], [1], [0, 0, 1, 1], [], []>} : vector<8x32xf32>, vector<32x32xf32>, vector<8x32xf32> -> vector<8x32xf32>
    %11 = vector.broadcast %9 : vector<1x32xf32> to vector<8x32xf32>
    %12 = arith.addf %10, %11 : vector<8x32xf32>
    %cst_11 = arith.constant 0.000000e+00 : f32
    %13 = vector.broadcast %cst_11 : f32 to vector<8x32xf32>
    %14 = arith.maximumf %12, %13 : vector<8x32xf32>
    %c0_12 = arith.constant 0 : index
    %c0_13 = arith.constant 0 : index
    %15 = vector.load %arg6[%c0_12, %c0_13] : memref<32x32xf32, #tpu.memory_space<vmem>>, vector<32x32xf32>
    %cst_14 = arith.constant dense<0.000000e+00> : vector<8x32xf32>
    %16 = tpu.matmul %14, %15, %cst_14 {dimension_numbers = #tpu.dot_dimension_numbers<[1], [0], [0], [1], [0, 0, 1, 1], [], []>} : vector<8x32xf32>, vector<32x32xf32>, vector<8x32xf32> -> vector<8x32xf32>
    %c0_15 = arith.constant 0 : index
    %c0_16 = arith.constant 0 : index
    %17 = vector.load %arg7[%c0_15, %c0_16] : memref<1x32xf32, #tpu.memory_space<vmem>>, vector<1x32xf32>
    %18 = vector.broadcast %17 : vector<1x32xf32> to vector<8x32xf32>
    %19 = arith.addf %16, %18 : vector<8x32xf32>
    %20 = arith.mulf %19, %19 : vector<8x32xf32>
    %c0_17 = arith.constant 0 : index
    %c0_18 = arith.constant 0 : index
    %21 = vector.load %arg8[%c0_17, %c0_18] : memref<32x4xf32, #tpu.memory_space<vmem>>, vector<32x4xf32>
    %cst_19 = arith.constant dense<0.000000e+00> : vector<8x4xf32>
    %22 = tpu.matmul %20, %21, %cst_19 {dimension_numbers = #tpu.dot_dimension_numbers<[1], [0], [0], [1], [0, 0, 1, 1], [], []>, precision = #tpu.contract_precision<fp32>} : vector<8x32xf32>, vector<32x4xf32>, vector<8x4xf32> -> vector<8x4xf32>
    %23 = math.sqrt %22 : vector<8x4xf32>
    %24 = math.cos %23 : vector<8x4xf32>
    %c0_20 = arith.constant 0 : index
    %c0_21 = arith.constant 0 : index
    %25 = vector.load %arg11[%c0_20, %c0_21] : memref<8x4xf32, #tpu.memory_space<vmem>>, vector<8x4xf32>
    tpu.vector_store %arg11[%c0_20, %c0_21], %24 {strides = array<i32>} : memref<8x4xf32, #tpu.memory_space<vmem>>, vector<8x4xf32>,
    %26 = math.sin %23 : vector<8x4xf32>
    %cst_22 = arith.constant 9.99999997E-7 : f32
    %27 = vector.broadcast %cst_22 : f32 to vector<8x4xf32>
    %28 = arith.addf %23, %27 : vector<8x4xf32>
    %29 = arith.divf %26, %28 : vector<8x4xf32>
    %c0_23 = arith.constant 0 : index
    %c0_24 = arith.constant 0 : index
    %30 = vector.load %arg9[%c0_23, %c0_24] : memref<4x32xf32, #tpu.memory_space<vmem>>, vector<4x32xf32>
    %cst_25 = arith.constant dense<0.000000e+00> : vector<8x32xf32>
    %31 = tpu.matmul %29, %30, %cst_25 {dimension_numbers = #tpu.dot_dimension_numbers<[1], [0], [0], [1], [0, 0, 1, 1], [], []>, precision = #tpu.contract_precision<fp32>} : vector<8x4xf32>, vector<4x32xf32>, vector<8x32xf32> -> vector<8x32xf32>
    %32 = arith.mulf %31, %19 : vector<8x32xf32>
    %c0_26 = arith.constant 0 : index
    %c0_27 = arith.constant 0 : index
    %33 = vector.load %arg10[%c0_26, %c0_27] : memref<8x32xf32, #tpu.memory_space<vmem>>, vector<8x32xf32>
    tpu.vector_store %arg10[%c0_26, %c0_27], %32 {strides = array<i32>} : memref<8x32xf32, #tpu.memory_space<vmem>>, vector<8x32xf32>,
    return
  }
  func.func @transform_0(%arg0: i32) -> (i32, i32) {
    %c0_i32 = arith.constant 0 : i32
    %c0_i32_0 = arith.constant 0 : i32
    return %arg0, %c0_i32 : i32, i32
  }
  func.func @transform_1(%arg0: i32) -> (i32, i32) {
    %c0_i32 = arith.constant 0 : i32
    %c0_i32_0 = arith.constant 0 : i32
    %c0_i32_1 = arith.constant 0 : i32
    return %c0_i32, %c0_i32_0 : i32, i32
  }
  func.func @transform_2(%arg0: i32) -> (i32, i32) {
    %c0_i32 = arith.constant 0 : i32
    %c0_i32_0 = arith.constant 0 : i32
    %c0_i32_1 = arith.constant 0 : i32
    return %c0_i32, %c0_i32_0 : i32, i32
  }
  func.func @transform_3(%arg0: i32) -> (i32, i32) {
    %c0_i32 = arith.constant 0 : i32
    %c0_i32_0 = arith.constant 0 : i32
    %c0_i32_1 = arith.constant 0 : i32
    return %c0_i32, %c0_i32_0 : i32, i32
  }
  func.func @transform_4(%arg0: i32) -> (i32, i32) {
    %c0_i32 = arith.constant 0 : i32
    %c0_i32_0 = arith.constant 0 : i32
    %c0_i32_1 = arith.constant 0 : i32
    return %c0_i32, %c0_i32_0 : i32, i32
  }
  func.func @transform_5(%arg0: i32) -> (i32, i32) {
    %c0_i32 = arith.constant 0 : i32
    %c0_i32_0 = arith.constant 0 : i32
    %c0_i32_1 = arith.constant 0 : i32
    return %c0_i32, %c0_i32_0 : i32, i32
  }
  func.func @transform_6(%arg0: i32) -> (i32, i32) {
    %c0_i32 = arith.constant 0 : i32
    %c0_i32_0 = arith.constant 0 : i32
    %c0_i32_1 = arith.constant 0 : i32
    return %c0_i32, %c0_i32_0 : i32, i32
  }
  func.func @transform_7(%arg0: i32) -> (i32, i32) {
    %c0_i32 = arith.constant 0 : i32
    %c0_i32_0 = arith.constant 0 : i32
    %c0_i32_1 = arith.constant 0 : i32
    return %c0_i32, %c0_i32_0 : i32, i32
  }
  func.func @transform_8(%arg0: i32) -> (i32, i32) {
    %c0_i32 = arith.constant 0 : i32
    %c0_i32_0 = arith.constant 0 : i32
    %c0_i32_1 = arith.constant 0 : i32
    return %c0_i32, %c0_i32_0 : i32, i32
  }
  func.func @transform_9(%arg0: i32) -> (i32, i32) {
    %c0_i32 = arith.constant 0 : i32
    %c0_i32_0 = arith.constant 0 : i32
    return %arg0, %c0_i32 : i32, i32
  }
  func.func @transform_10(%arg0: i32) -> (i32, i32) {
    %c0_i32 = arith.constant 0 : i32
    %c0_i32_0 = arith.constant 0 : i32
    return %arg0, %c0_i32 : i32, i32
  }
}

</mosaic_0001>

<bundles_post_ra>
// kernel: tpu_custom_call.1
= control target key start
LH: loop header
LB: loop body
LE: loop exit
PB: predicated region body
PF: predicated region fallthrough
CT: control target
= control target key end

     0   :  { %16 = vsyncpa [#allocation3], 0  ;;  %s2117_s0 = inlined_call_operand.vmem [shape: f32[8,16], index: 0, kind: input, shape index: {}]   ;;  %s2118_s1 = inlined_call_operand.hbm [shape: f32[16,32], index: 1, kind: input, shape index: {}]   ;;  %s2119_s2 = inlined_call_operand.vmem [shape: f32[1,32], index: 2, kind: input, shape index: {}]   ;;  %s2120_s3 = inlined_call_operand.vmem [shape: f32[32,32], index: 3, kind: input, shape index: {}]   ;;  %s2121_s4 = inlined_call_operand.vmem [shape: f32[1,32], index: 4, kind: input, shape index: {}]   ;;  %s2122_s5 = inlined_call_operand.hbm [shape: f32[32,32], index: 5, kind: input, shape index: {}]   ;;  %s2123_s6 = inlined_call_operand.vmem [shape: f32[1,32], index: 6, kind: input, shape index: {}]   ;;  %s2124_s7 = inlined_call_operand.vmem [shape: f32[32,4], index: 7, kind: input, shape index: {}]   ;;  %s2125_s8 = inlined_call_operand.vmem [shape: f32[4,32], index: 8, kind: input, shape index: {}]   ;;  %s2126_s9 = inlined_call_operand.hbm [shape: f32[8,32], index: 9, kind: output, shape index: {0}]   ;;  %s2127_s10 = inlined_call_operand.vmem [shape: f32[8,4], index: 10, kind: output, shape index: {1}]  }
   0x1   :  { %17 = vsyncpa [#allocation6], 0 }
   0x2   :  { %18 = vsyncpa [#allocation4], 0  ;;  %s1869_s13 = smov [#allocation2]   ;;  %s1797_s17 = scalar_lea.hbm %s2118_s1, 256 }
   0x3   :  { %s26_s14 = sshll.u32 %s1869_s13, 4  ;;  %p1798_p0 = scmp.ne.s32.totalorder %s2118_s1, %s1797_s17  ;;  %s27_s14 = int_to_ptr.vmem [resolvable:$true] %s26_s14 }
   0x4   :  { %p1801_p1 = scmp.lt.u32.totalorder %s1797_s17, %s2118_s1 }
   0x6   :  { %p1803_p2 = pnand %p1801_p1, %p1798_p0 }
   0x8   :  { %1806 = shalt.err (!%p1803_p2)
}
   0x9   :  { %s1807_s22 = scalar_lea.vmem %s27_s14, 256  ;;  %p1812_p4 = scmp.lt.s32.totalorder %s27_s14, %s27_s14 }
   0xa   :  { %p1808_p3 = scmp.ne.s32.totalorder %s27_s14, %s1807_s22  ;;  %p1813_p5 = scmp.lt.s32.totalorder %s1807_s22, %s1807_s22 }
   0xc   :  { %p1814_p6 = por %p1813_p5, %p1812_p4 }
   0xe   :  { %p1815_p7 = pnand %p1814_p6, %p1808_p3 }
  0x10   :  { %1818 = shalt.err (!%p1815_p7)
}
  0x11   :  { %s1870_s23 = smov 128   ;;  %s1871_s24 = smov 8  }
  0x12   :  { %32 = dma.hbm_to_vmem [thread:$0]  %s2118_s1, 256, %s27_s14, [#allocation3], %s1870_s23, %s1870_s23, %s1871_s24  }
  0x13   :  { %s1872_s27 = smov [#allocation5]   ;;  %s1819_s11 = scalar_lea.hbm %s2122_s5, 512 }
  0x14   :  { %s44_s28 = sshll.u32 %s1872_s27, 4  ;;  %p1820_p8 = scmp.ne.s32.totalorder %s2122_s5, %s1819_s11  ;;  %s45_s28 = int_to_ptr.vmem [resolvable:$true] %s44_s28 }
  0x15   :  { %p1823_p9 = scmp.lt.u32.totalorder %s1819_s11, %s2122_s5 }
  0x17   :  { %p1825_p10 = pnand %p1823_p9, %p1820_p8 }
  0x19   :  { %1828 = shalt.err (!%p1825_p10)
}
  0x1a   :  { %s1829_s17 = scalar_lea.vmem %s45_s28, 512  ;;  %p1834_p12 = scmp.lt.s32.totalorder %s45_s28, %s45_s28 }
  0x1b   :  { %p1830_p11 = scmp.ne.s32.totalorder %s45_s28, %s1829_s17  ;;  %p1835_p13 = scmp.lt.s32.totalorder %s1829_s17, %s1829_s17 }
  0x1d   :  { %p1836_p0 = por %p1835_p13, %p1834_p12 }
  0x1f   :  { %p1837_p1 = pnand %p1836_p0, %p1830_p11 }
  0x21   :  { %1840 = shalt.err (!%p1837_p1)
}
  0x22   :  { %50 = dma.hbm_to_vmem [thread:$0]  %s2122_s5, 512, %s45_s28, [#allocation6], %s1870_s23, %s1870_s23, %s1871_s24  }
  0x23   :  { %1863 = dma.done.wait [#allocation3], 256  }
  0x24   :  { %1864 = vsyncadd [#allocation3], 4294967040 }
  0x25   :  { %1865 = dma.done.wait [#allocation6], 512  }
  0x26   :  { %1866 = vsyncadd [#allocation6], 4294966784  ;;  %v1873_v0 = vmov 0.0|0.0   ;;  %vm1874_vm0 = vmmov 0   ;;  %v1875_v1 = vmov 0.0   ;;  %v64_v2 = vld [vmem:[#allocation2] sm:$0xff] }
  0x27   :  { %1700 = vmatprep.subr.bf16.mxu0 %v1873_v0  ;;  %1579 = vmatprep.mubr.msk.f32.mxu0 %vm1874_vm0, %v1875_v1  ;;  %v65_v3 = vld [vmem:[#allocation2 + $0x8] sm:$0xff]  ;;  %v148_v5 = vld [vmem:[%s2120_s3] sm:$0xff]  ;;  %vm73_vm1 = vcmask 130048   ;;  %v150_v9 = vld [vmem:[%s2120_s3 + $0x10] sm:$0xff]  ;;  %vm159_vm2 = vcmask 261120   ;;  %vm1034_vm3 = vcmask 1043456  }
  0x28   :  { %1715 = vmatprep.subr.bf16.mxu1 %v1873_v0  ;;  %1612 = vmatprep.mubr.msk.f32.mxu1 %vm1874_vm0, %v1875_v1  ;;  %v1701_v4 = vpack.c.bf16 %v65_v3, %v64_v2  ;;  %v149_v6 = vld [vmem:[%s2120_s3 + $0x8] sm:$0xff]  ;;  %v63_v7 = vld [vmem:[%s2117_s0] sm:$0xff]  ;;  %v151_v10 = vld [vmem:[%s2120_s3 + $0x18] sm:$0xff] }
  0x29   :  { %v1704_v8 = vpack.c.bf16 %v149_v6, %v148_v5  ;;  %v1707_v11 = vpack.c.bf16 %v151_v10, %v150_v9  ;;  %v1506_v12 = vld [vmem:[%s2119_s2] ss:$0 sm:$0xff]  ;;  %v234_v13 = vld [vmem:[#allocation5] sm:$0xff]  ;;  %v235_v14 = vld [vmem:[#allocation5 + $0x8] sm:$0xff] }
  0x2a   :  { %1702 = vmatpush3.bf16.msra.mxu0 %v1701_v4  ;;  %v1710_v18 = vpack.c.bf16 %v235_v14, %v234_v13  ;;  %v236_v20 = vld [vmem:[#allocation5 + $0x10] sm:$0xff]  ;;  %v237_v21 = vld [vmem:[#allocation5 + $0x18] sm:$0xff]  ;;  %v321_v35 = vld [vmem:[%s2124_s7 + $0x10] sm:$0xff] }
  0x2b   :  { %1703 = vmatprep.subr.bf16.mxu0 %v1873_v0  ;;  %v1713_v22 = vpack.c.bf16 %v237_v21, %v236_v20  ;;  %v1508_v23 = vld [vmem:[%s2121_s4] ss:$0 sm:$0xff]  ;;  %v320_v29 = vld [vmem:[%s2124_s7 + $0x8] sm:$0xff]  ;;  %v322_v36 = vld [vmem:[%s2124_s7 + $0x18] sm:$0xff]  ;;  %v333_v37 = vand.u32 4294901760, %v321_v35 }
  0x2c   :  { %v319_v28 = vld [vmem:[%s2124_s7] sm:$0xff]  ;;  %v330_v31 = vand.u32 4294901760, %v320_v29  ;;  %v336_v38 = vand.u32 4294901760, %v322_v36 }
  0x2d   :  { %1580 = vmatmul.mubr.msk.f32.vlgmr.msra.gmra.mrb[0].mxu0 %vm73_vm1, %v63_v7  ;;  %v327_v30 = vand.u32 4294901760, %v319_v28  ;;  %v421_v42 = vsub.f32 %v321_v35, %v333_v37  ;;  %v1510_v60 = vld [vmem:[%s2123_s6] ss:$0 sm:$0xff]  ;;  %vm921_vm1 = vcmask 31744  }
  0x2e   :  { %1705 = vmatpush3.bf16.msra.mxu0 %v1704_v8  ;;  %1590 = vmatprep.mubr.msk.f32.mxu0 %vm1874_vm0, %v1875_v1  ;;  %v414_v34 = vsub.f32 %v320_v29, %v330_v31  ;;  %v1719_v41 = vpack.c.bf16 %v336_v38, %v333_v37  ;;  %v428_v43 = vsub.f32 %v322_v36, %v336_v38  ;;  %v1030_v9 = vld [vmem:[%s2125_s8] sm:$0xf]  ;;  %v1879_v36 = vmov 2102212464  }
  0x2f   :  { %1706 = vmatprep.subr.bf16.mxu0 %v1873_v0  ;;  %v2008_v32 = vpack.c.bf16 %v330_v31, %v327_v30  ;;  %v407_v33 = vsub.f32 %v319_v28, %v327_v30  ;;  %v422_v47 = vand.u32 4294901760, %v421_v42  ;;  %v2051_v10 = vsel %vm1034_vm3, %v1030_v9, 0 }
  0x30   :  { %v415_v40 = vand.u32 4294901760, %v414_v34  ;;  %v429_v48 = vand.u32 4294901760, %v428_v43  ;;  %v1731_v57 = vpack.c.bf16 %v428_v43, %v421_v42  ;;  %v1876_v28 = vmov 683565275  }
  0x31   :  { %1717 = vmatpush3.bf16.msra.mxu1 %v2008_v32  ;;  %v408_v39 = vand.u32 4294901760, %v407_v33  ;;  %v423_v50 = vsub.f32 %v421_v42, %v422_v47  ;;  %v1728_v56 = vpack.c.bf16 %v414_v34, %v407_v33  ;;  %v1877_v30 = vmov 2475754826  }
  0x32   :  { %1708 = vmatpush3.bf16.msra.mxu0 %v1707_v11  ;;  %1718 = vmatprep.subr.bf16.mxu1 %v1873_v0  ;;  %v416_v45 = vsub.f32 %v414_v34, %v415_v40  ;;  %v430_v51 = vsub.f32 %v428_v43, %v429_v48  ;;  %v1743_v59 = vpack.c.bf16 %v429_v48, %v422_v47  ;;  %v2054_v11 = vand.u32 4294901760, %v2051_v10 }
  0x33   :  { %1709 = vmatprep.subr.bf16.mxu0 %v1873_v0  ;;  %v409_v44 = vsub.f32 %v407_v33, %v408_v39  ;;  %v424_v53 = vand.u32 4294901760, %v423_v50  ;;  %v1740_v58 = vpack.c.bf16 %v415_v40, %v408_v39  ;;  %v1878_v33 = vmov 2131351028  }
  0x34   :  { %v417_v49 = vand.u32 4294901760, %v416_v45  ;;  %v431_v54 = vand.u32 4294901760, %v430_v51  ;;  %v1880_v39 = vmov 920167782   ;;  %v1881_v42 = vmov 1326507024  }
  0x35   :  { %1720 = vmatpush3.bf16.msra.mxu1 %v1719_v41  ;;  %v410_v46 = vand.u32 4294901760, %v409_v44 }
  0x36   :  { %1721 = vmatprep.subr.bf16.mxu1 %v1873_v0  ;;  %v1725_v55 = vpack.c.bf16 %v431_v54, %v424_v53 }
  0x37   :  { %v1722_v52 = vpack.c.bf16 %v417_v49, %v410_v46 }
 0x100   :  { %v143_v15 = vpop.f32.mrb[0].mxu0 }
 0x101   :  { %v144_v16 = vadd.f32 %v1506_v12, %v143_v15  ;;  %v1581_v17 = vpop.f32.mrb[1].mxu0 }
 0x103   :  { %v147_v19 = vmax.f32 %v144_v16, 0.0 }
 0x105   :  { %1591 = vmatmul.mubr.msk.f32.vlgmr.msra.gmra.mrb[2].mxu0 %vm159_vm2, %v147_v19 }
 0x106   :  { %1711 = vmatpush3.bf16.msra.mxu0 %v1710_v18  ;;  %1601 = vmatprep.mubr.msk.f32.mxu0 %vm1874_vm0, %v1875_v1 }
 0x107   :  { %1712 = vmatprep.subr.bf16.mxu0 %v1873_v0 }
 0x10a   :  { %1714 = vmatpush3.bf16.msra.mxu0 %v1713_v22 }
 0x10b   :  { %1670 = vmatprep.subr.mxu0 %v1875_v1 }
 0x1d8   :  { %v229_v24 = vpop.f32.mrb[2].mxu0 }
 0x1d9   :  { %v230_v25 = vadd.f32 %v1508_v23, %v229_v24  ;;  %v1592_v26 = vpop.f32.mrb[3].mxu0 }
 0x1db   :  { %v233_v27 = vmax.f32 %v230_v25, 0.0 }
 0x1dd   :  { %1602 = vmatmul.mubr.msk.f32.vlgmr.msra.gmra.mrb[4].mxu0 %vm159_vm2, %v233_v27 }
 0x1de   :  { %1672 = vmatprep.mubr.msk.f32.mxu0 %vm1874_vm0, %v1875_v1  ;;  %1671 = vmatpush3.msra.mxu0 %v2054_v11 }
 0x1df   :  { %1675 = vmatprep.subr.mxu0 %v1875_v1 }
 0x2b0   :  { %v314_v61 = vpop.f32.mrb[4].mxu0 }
 0x2b1   :  { %v2022_v62 = vadd.f32 %v1510_v60, %v314_v61  ;;  %v1603_v63 = vpop.f32.mrb[5].mxu0 }
 0x2b3   :  { %v318_v2 = vmul.f32 %v2022_v62, %v2022_v62 }
 0x2b5   :  { %v324_v3 = vsel %vm159_vm2, %v318_v2, 0 }
 0x2b6   :  { %v395_v4 = vand.u32 4294901760, %v324_v3 }
 0x2b8   :  { %v396_v5 = vsub.f32 %v324_v3, %v395_v4 }
 0x2ba   :  { %v397_v6 = vand.u32 4294901760, %v396_v5 }
 0x2bc   :  { %v398_v7 = vsub.f32 %v396_v5, %v397_v6 }
 0x2be   :  { %v399_v8 = vand.u32 4294901760, %v398_v7 }
 0x2c0   :  { %1613 = vmatmul.mubr.f32.vlgmr.msra.gmra.mrb[0].mxu1 %v399_v8 }
 0x2c1   :  { %1723 = vmatpush3.bf16.msra.mxu1 %v1722_v52  ;;  %1623 = vmatprep.mubr.msk.f32.mxu1 %vm1874_vm0, %v1875_v1 }
 0x2c2   :  { %1724 = vmatprep.subr.bf16.mxu1 %v1873_v0 }
 0x2c5   :  { %1726 = vmatpush3.bf16.msra.mxu1 %v1725_v55 }
 0x2c6   :  { %1727 = vmatprep.subr.bf16.mxu1 %v1873_v0 }
 0x2c8   :  { %1624 = vmatmul.mubr.f32.vlgmr.msra.gmra.mrb[0].mxu1 %v395_v4 }
 0x2c9   :  { %1729 = vmatpush3.bf16.msra.mxu1 %v1728_v56  ;;  %1634 = vmatprep.mubr.msk.f32.mxu1 %vm1874_vm0, %v1875_v1 }
 0x2ca   :  { %1730 = vmatprep.subr.bf16.mxu1 %v1873_v0 }
 0x2cd   :  { %1732 = vmatpush3.bf16.msra.mxu1 %v1731_v57 }
 0x2ce   :  { %1733 = vmatprep.subr.bf16.mxu1 %v1873_v0 }
 0x2d0   :  { %1635 = vmatmul.mubr.f32.vlgmr.msra.gmra.mrb[0].mxu1 %v396_v5 }
 0x2d1   :  { %1735 = vmatpush3.bf16.msra.mxu1 %v2008_v32  ;;  %1645 = vmatprep.mubr.msk.f32.mxu1 %vm1874_vm0, %v1875_v1 }
 0x2d2   :  { %1736 = vmatprep.subr.bf16.mxu1 %v1873_v0 }
 0x2d5   :  { %1738 = vmatpush3.bf16.msra.mxu1 %v1719_v41 }
 0x2d6   :  { %1739 = vmatprep.subr.bf16.mxu1 %v1873_v0 }
 0x2d8   :  { %1646 = vmatmul.mubr.f32.vlgmr.msra.gmra.mrb[0].mxu1 %v397_v6 }
 0x2d9   :  { %1741 = vmatpush3.bf16.msra.mxu1 %v1740_v58  ;;  %1656 = vmatprep.mubr.msk.f32.mxu1 %vm1874_vm0, %v1875_v1 }
 0x2da   :  { %1742 = vmatprep.subr.bf16.mxu1 %v1873_v0 }
 0x2dd   :  { %1744 = vmatpush3.bf16.msra.mxu1 %v1743_v59 }
 0x2de   :  { %1745 = vmatprep.subr.bf16.mxu1 %v1873_v0 }
 0x2e0   :  { %1657 = vmatmul.mubr.f32.vlgmr.msra.gmra.mrb[0].mxu1 %v395_v4 }
 0x2e1   :  { %1747 = vmatpush3.bf16.msra.mxu1 %v2008_v32  ;;  %1667 = vmatprep.mubr.msk.f32.mxu1 %vm1874_vm0, %v1875_v1 }
 0x2e2   :  { %1748 = vmatprep.subr.bf16.mxu1 %v1873_v0 }
 0x2e5   :  { %1750 = vmatpush3.bf16.msra.mxu1 %v1719_v41 }
 0x2e8   :  { %1668 = vmatmul.mubr.f32.vlgmr.msra.gmra.mrb[0].mxu1 %v395_v4 }
 0x3bb   :  { %v807_v12 = vpop.f32.mrb[0].mxu1 }
 0x3bc   :  { %1789 = vrsqrt.f32 %v807_v12  ;;  %v1669_v13 = vpop.f32.mrb[1].mxu1  ;;  %vm813_vm4 = vcmp.eq.f32.partialorder %v807_v12, inf  ;;  %v816_v15 = vand.u32 2147483648, %v807_v12  ;;  %vm815_vm5 = vcmp.eq.f32.partialorder %v807_v12, 0.0 }
 0x3c6   :  { %v1790_v0 = vpop.eup %1789 }
 0x3c7   :  { %v812_v14 = vmul.f32 %v1790_v0, %v807_v12 }
 0x3c9   :  { %v814_v16 = vsel %vm813_vm4, %v807_v12, %v812_v14 }
 0x3ca   :  { %v2058_v17 = vsel %vm815_vm5, %v816_v15, %v814_v16 }
 0x3cb   :  { %v821_v18 = vand.u32 2139095040, %v2058_v17  ;;  %v818_v22 = vand.u32 2147483647, %v2058_v17  ;;  %vm820_vm13 = vcmp.lt.s32.totalorder %v2058_v17, 0 }
 0x3cd   :  { %v822_v19 = vshrl.u32 %v821_v18, 23  ;;  %v825_v25 = vand.u32 8388607, %v818_v22  ;;  %vm819_vm14 = vcmp.le.f32.partialorder %v818_v22, 0.7853982 }
 0x3cf   :  { %v1512_v20 = vadd.s32 4294967169, %v822_v19  ;;  %v826_v44 = vor.u32 8388608, %v825_v25 }
 0x3d1   :  { %v828_v21 = vadd.s32 1, %v1512_v20  ;;  %v866_v58 = vshll.u32 %v826_v44, 8 }
 0x3d3   :  { %vm829_vm6 = vcmp.gt.s32.totalorder %v828_v21, 0 }
 0x3d4   :  { %v830_v23 = vsel %vm829_vm6, %v828_v21, 0 }
 0x3d5   :  { %v832_v24 = vand.u32 31, %v830_v23  ;;  %v831_v27 = vshrl.u32 %v830_v23, 5 }
 0x3d7   :  { %v833_v26 = vsub.s32 32, %v832_v24  ;;  %v835_v29 = vshll.u32 %v1876_v28, %v832_v24  ;;  %v838_v31 = vshll.u32 %v1877_v30, %v832_v24  ;;  %v841_v35 = vshll.u32 %v1878_v33, %v832_v24 }
 0x3d8   :  { %v844_v38 = vshll.u32 %v1879_v36, %v832_v24  ;;  %v847_v41 = vshll.u32 %v1880_v39, %v832_v24  ;;  %vm850_vm7 = vcmp.lt.s32.totalorder %v831_v27, 1  ;;  %vm853_vm8 = vcmp.lt.s32.totalorder %v831_v27, 4 }
 0x3d9   :  { %v836_v32 = vshrl.u32 %v1877_v30, %v833_v26  ;;  %v839_v34 = vshrl.u32 %v1878_v33, %v833_v26  ;;  %v842_v37 = vshrl.u32 %v1879_v36, %v833_v26  ;;  %v845_v40 = vshrl.u32 %v1880_v39, %v833_v26 }
 0x3da   :  { %v848_v43 = vshrl.u32 %v1881_v42, %v833_v26  ;;  %v834_v53 = vshrl.u32 %v1876_v28, %v833_v26  ;;  %vm852_vm9 = vcmp.lt.s32.totalorder %v831_v27, 3  ;;  %vm851_vm10 = vcmp.lt.s32.totalorder %v831_v27, 2 }
 0x3db   :  { %v837_v45 = vor.u32 %v836_v32, %v835_v29  ;;  %v840_v46 = vor.u32 %v839_v34, %v838_v31  ;;  %v843_v47 = vor.u32 %v842_v37, %v841_v35  ;;  %v846_v48 = vor.u32 %v845_v40, %v844_v38 }
 0x3dc   :  { %v849_v49 = vor.u32 %v848_v43, %v847_v41  ;;  %v1027_v41 = vadd.f32 1e-06, %v2058_v17 }
 0x3dd   :  { %v855_v50 = vsel %vm853_vm8, %v843_v47, 2102212464  ;;  %v858_v51 = vsel %vm850_vm7, %v837_v45, %v840_v46  ;;  %v862_v52 = vsel %vm850_vm7, %v840_v46, %v843_v47  ;;  %v859_v54 = vsel %vm853_vm8, %v846_v48, 920167782 }
 0x3de   :  { %v863_v55 = vsel %vm853_vm8, %v849_v49, 1326507024  ;;  %v860_v56 = vsel %vm852_vm9, %v843_v47, %v859_v54  ;;  %v854_v59 = vsel %vm850_vm7, %v834_v53, %v837_v45  ;;  %v856_v60 = vsel %vm852_vm9, %v840_v46, %v855_v50 }
 0x3df   :  { %v864_v57 = vsel %vm852_vm9, %v846_v48, %v863_v55  ;;  %v861_v61 = vsel %vm851_vm10, %v858_v51, %v860_v56  ;;  %v857_v6 = vsel %vm851_vm10, %v854_v59, %v856_v60  ;;  %vm910_vm8 = vweird.f32 %v2058_v17 }
 0x3e0   :  { %v865_v63 = vsel %vm851_vm10, %v862_v52, %v864_v57  ;;  %v2067_v4 = vmul.u32.u64.low %v866_v58, %v861_v61  ;;  %v2068_v5 = vmul.u32.u64.high %v866_v58, %v861_v61, %v2067_v4  ;;  %v873_v8 = vmul.u32 %v866_v58, %v857_v6 }
 0x3e1   :  { %v2064_v2 = vmul.u32.u64.low %v866_v58, %v865_v63  ;;  %v2065_v3 = vmul.u32.u64.high %v866_v58, %v865_v63, %v2064_v2  ;;  %v1116_v52 = vsub.f32 %v2051_v10, %v2054_v11 }
 0x3e2   :  { %v876_v7 = vadd.s32 1, %v2068_v5 }
 0x3e3   :  { %vm875_vm11 = vc.u32 %v2065_v3, %v2067_v4  ;;  %v874_v23 = vadd.s32 %v2067_v4, %v2065_v3  ;;  %v1117_v60 = vand.u32 4294901760, %v1116_v52 }
 0x3e4   :  { %v877_v9 = vsel %vm875_vm11, %v876_v7, %v2068_v5 }
 0x3e5   :  { %v878_v12 = vadd.s32 %v877_v9, %v873_v8  ;;  %v1118_v2 = vsub.f32 %v1116_v52, %v1117_v60 }
 0x3e7   :  { %v879_v13 = vadd.s32 536870912, %v878_v12 }
 0x3e9   :  { %v880_v0 = vshrl.u32 %v879_v13, 30 }
 0x3eb   :  { %v881_v14 = vshll.u32 %v880_v0, 30  ;;  %v904_v35 = vsub.s32 4, %v880_v0 }
 0x3ed   :  { %v882_v15 = vsub.s32 %v878_v12, %v881_v14  ;;  %v905_v38 = vsel %vm820_vm13, %v904_v35, %v880_v0 }
 0x3ee   :  { %v907_v40 = vsel %vm819_vm14, 0, %v905_v38 }
 0x3ef   :  { %v884_v16 = vsub.s32 0, %v882_v15  ;;  %v1016_v42 = vadd.s32 3, %v907_v40  ;;  %v911_v43 = vand.u32 3, %v907_v40 }
 0x3f1   :  { %v1513_v18 = vmin.u32 %v884_v16, %v882_v15  ;;  %v1017_v44 = vand.u32 3, %v1016_v42  ;;  %vm916_vm15 = vcmp.eq.s32.totalorder %v911_v43, 2  ;;  %vm913_vm4 = vcmp.eq.s32.totalorder %v911_v43, 0 }
 0x3f2   :  { %vm912_vm6 = vcmp.lt.s32.totalorder %v911_v43, 2 }
 0x3f3   :  { %v886_v19 = vclz %v1513_v18  ;;  %vm1022_vm3 = vcmp.eq.s32.totalorder %v1017_v44, 2  ;;  %vm1019_vm5 = vcmp.eq.s32.totalorder %v1017_v44, 0  ;;  %vm1018_vm7 = vcmp.lt.s32.totalorder %v1017_v44, 2 }
 0x3f5   :  { %v1514_v20 = vadd.s32 4294967294, %v886_v19 }
 0x3f7   :  { %vm1515_vm12 = vcmp.lt.s32.totalorder %v1514_v20, 0 }
 0x3f8   :  { %v889_v21 = vsel %vm1515_vm12, 0, %v1514_v20 }
 0x3f9   :  { %v890_v24 = vsub.s32 32, %v889_v21  ;;  %v894_v25 = vsub.s32 4294967266, %v889_v21  ;;  %v891_v26 = vshll.u32 %v882_v15, %v889_v21 }
 0x3fb   :  { %v892_v27 = vshrl.u32 %v874_v23, %v890_v24  ;;  %v895_v28 = vadd.s32 127, %v894_v25 }
 0x3fd   :  { %v893_v29 = vor.u32 %v892_v27, %v891_v26  ;;  %v896_v30 = vshll.u32 %v895_v28, 23 }
 0x3ff   :  { %v897_v31 = vor.u32 4788187, %v896_v30  ;;  %v900_v33 = vcvt.s32.f32 %v893_v29 }
 0x401   :  { %v898_v32 = vand.u32 2147483647, %v897_v31 }
 0x403   :  { %v901_v34 = vmul.f32 %v900_v33, %v898_v32 }
 0x405   :  { %v902_v36 = vxor.u32 2147483648, %v901_v34 }
 0x407   :  { %v903_v37 = vsel %vm820_vm13, %v902_v36, %v901_v34 }
 0x408   :  { %v906_v39 = vsel %vm819_vm14, %v2058_v17, %v903_v37  ;;  %v1119_v17 = vand.u32 4294901760, %v1118_v2 }
 0x409   :  { %1791 = vcosq.f32 %v906_v39 }
 0x40a   :  { %1793 = vsinq.f32 %v906_v39 }
 0x40b   :  { %1795 = vrcp.f32 %v1027_v41 }
 0x413   :  { %v1792_v45 = vpop.eup %1791 }
 0x414   :  { %v1794_v46 = vpop.eup %1793  ;;  %v917_v47 = vxor.u32 2147483648, %v1792_v45 }
 0x415   :  { %v914_v48 = vxor.u32 2147483648, %v1794_v46  ;;  %v1796_v55 = vpop.eup %1795 }
 0x416   :  { %v918_v22 = vsel %vm916_vm15, %v917_v47, %v1794_v46  ;;  %v1024_v49 = vsel %vm1022_vm3, %v917_v47, %v1794_v46 }
 0x417   :  { %v915_v50 = vsel %vm913_vm4, %v1792_v45, %v914_v48  ;;  %v1021_v51 = vsel %vm1019_vm5, %v1792_v45, %v914_v48 }
 0x418   :  { %v919_v53 = vsel %vm912_vm6, %v915_v50, %v918_v22  ;;  %v1025_v54 = vsel %vm1018_vm7, %v1021_v51, %v1024_v49 }
 0x419   :  { %v920_v56 = vsel %vm910_vm8, nan, %v919_v53  ;;  %v1026_v57 = vsel %vm910_vm8, nan, %v1025_v54 }
 0x41a   :  { %922 = vst.msk [vmem:[%s2127_s10] sm:$0xff] %vm921_vm1, %v920_v56  ;;  %v1029_v58 = vmul.f32 %v1796_v55, %v1026_v57  ;;  %s1882_s10 = smov [#allocation7]  }
 0x41b   :  { %s1492_s14 = sshll.u32 %s1882_s10, 4  ;;  %s1493_s14 = int_to_ptr.vmem [resolvable:$true] %s1492_s14 }
 0x41c   :  { %v1032_v59 = vsel %vm921_vm1, %v1029_v58, 0  ;;  %s1841_s5 = scalar_lea.vmem %s1493_s14, 128  ;;  %p1846_p3 = scmp.lt.s32.totalorder %s1493_s14, %s1493_s14 }
 0x41d   :  { %v1104_v61 = vand.u32 4294901760, %v1032_v59  ;;  %p1842_p2 = scmp.ne.s32.totalorder %s1493_s14, %s1841_s5  ;;  %p1847_p4 = scmp.lt.s32.totalorder %s1841_s5, %s1841_s5 }
 0x41f   :  { %v1105_v63 = vsub.f32 %v1032_v59, %v1104_v61  ;;  %p1848_p5 = por %p1847_p4, %p1846_p3 }
 0x421   :  { %v1106_v10 = vand.u32 4294901760, %v1105_v63  ;;  %p1849_p6 = pnand %p1848_p5, %p1842_p2 }
 0x423   :  { %v1107_v3 = vsub.f32 %v1105_v63, %v1106_v10 }
 0x425   :  { %v1108_v4 = vand.u32 4294901760, %v1107_v3 }
 0x427   :  { %1673 = vmatmul.mubr.f32.vlgmr.msra.gmra.mrb[6].mxu0 %v1108_v4 }
 0x428   :  { %1676 = vmatpush3.msra.mxu0 %v1119_v17  ;;  %1677 = vmatprep.mubr.msk.f32.mxu0 %vm1874_vm0, %v1875_v1 }
 0x429   :  { %1680 = vmatprep.subr.mxu0 %v1875_v1 }
 0x42f   :  { %1678 = vmatmul.mubr.f32.vlgmr.msra.gmra.mrb[6].mxu0 %v1104_v61 }
 0x430   :  { %1681 = vmatpush3.msra.mxu0 %v1116_v52  ;;  %1682 = vmatprep.mubr.msk.f32.mxu0 %vm1874_vm0, %v1875_v1 }
 0x431   :  { %1685 = vmatprep.subr.mxu0 %v1875_v1 }
 0x437   :  { %1683 = vmatmul.mubr.f32.vlgmr.msra.gmra.mrb[6].mxu0 %v1105_v63 }
 0x438   :  { %1686 = vmatpush3.msra.mxu0 %v2054_v11  ;;  %1687 = vmatprep.mubr.msk.f32.mxu0 %vm1874_vm0, %v1875_v1 }
 0x439   :  { %1690 = vmatprep.subr.mxu0 %v1875_v1 }
 0x43f   :  { %1688 = vmatmul.mubr.f32.vlgmr.msra.gmra.mrb[6].mxu0 %v1106_v10 }
 0x440   :  { %1691 = vmatpush3.msra.mxu0 %v1117_v60  ;;  %1692 = vmatprep.mubr.msk.f32.mxu0 %vm1874_vm0, %v1875_v1 }
 0x441   :  { %1695 = vmatprep.subr.mxu0 %v1875_v1 }
 0x447   :  { %1693 = vmatmul.mubr.f32.vlgmr.msra.gmra.mrb[6].mxu0 %v1104_v61 }
 0x448   :  { %1696 = vmatpush3.msra.mxu0 %v2054_v11  ;;  %1697 = vmatprep.mubr.msk.f32.mxu0 %vm1874_vm0, %v1875_v1 }
 0x44f   :  { %1698 = vmatmul.mubr.f32.vlgmr.msra.gmra.mrb[6].mxu0 %v1104_v61 }
 0x522   :  { %v1480_v5 = vpop.f32.mrb[6].mxu0 }
 0x523   :  { %v1484_v6 = vmul.f32 %v1480_v5, %v2022_v62  ;;  %v1699_v7 = vpop.f32.mrb[7].mxu0 }
 0x525   :  { %1485 = vst.msk [vmem:[#allocation7] sm:$0xff] %vm159_vm2, %v1484_v6 }
 0x526   :  { %1852 = shalt.err (!%p1849_p6)
}
 0x527   :  { %s1853_s20 = scalar_lea.hbm %s2126_s9, 128 }
 0x528   :  { %p1854_p7 = scmp.ne.s32.totalorder %s2126_s9, %s1853_s20  ;;  %p1857_p8 = scmp.lt.u32.totalorder %s1853_s20, %s2126_s9 }
 0x52a   :  { %p1859_p9 = pnand %p1857_p8, %p1854_p7 }
 0x52c   :  { %1862 = shalt.err (!%p1859_p9)
}
 0x52d   :  { %1495 = dma.vmem_to_hbm [thread:$0]  %s1493_s14, 128, %s2126_s9, [#allocation4]  }
 0x52e   :  { %1867 = dma.done.wait [#allocation4], 128  }
 0x52f   :  { %1868 = vsyncadd [#allocation4], 4294967168 }
 0x530   :  { %1503 = vsyncpa [#allocation3], 1 }
 0x531   :  { %1504 = vsyncpa [#allocation6], 1 }
 0x532   :  { %1505 = vsyncpa [#allocation4], 1 }

</bundles_post_ra>
